<compile_context>
chip_gen: v6e
topology: v6e:2x2x1
jax: 0.10.0
libtpu: 0.0.40
codegen_flags: <defaults>
</compile_context>

<pallas_src>
import functools
import math

import jax
import jax.numpy as jnp
from jax import lax
from jax.experimental import pallas as pl
from jax.experimental.pallas import tpu as pltpu


def _round_up(x: int, m: int) -> int:
    return ((x + m - 1) // m) * m


def _pick_tm(M, H, x_bytes, res_bytes, out_bytes, w_bytes):
    """Token-tile size: big enough to amortize per-step overhead, small enough
    to keep the per-TC VMEM footprint well under 64 MiB (v7x)."""
    if M % 8 != 0:
        return M  # tiny / ragged token count: single full-extent block
    tm_max = 1024 if max(x_bytes, out_bytes) <= 2 else 512
    # Budget: double-buffered x/res/out tiles + ~6 f32 [TM,H] temporaries
    # + resident weight, target <= ~48 MiB.
    budget = 48 * 1024 * 1024 - H * H * w_bytes
    per_row = H * (2 * (x_bytes + res_bytes + out_bytes) + 6 * 4)
    if budget > 0:
        tm_max = min(tm_max, max(64, (budget // per_row) // 8 * 8))
    tm = min(tm_max, M)
    # Prefer >= 2 grid steps when there is real work so ("parallel",) can
    # split the token axis across v7x's two TensorCores.
    if tm == M and M > 256:
        tm = _round_up(M // 2, 8)
    return tm


def _vmem_limit_bytes(TM, H, x_bytes, res_bytes, out_bytes, w_bytes):
    stream = 2 * TM * H * (x_bytes + res_bytes + out_bytes)  # double-buffered tiles
    resident = H * H * w_bytes + 3 * H * 4                   # weight + LN params
    scratch = 6 * TM * H * 4                                 # f32 temporaries
    est = int(1.25 * (stream + resident + scratch))
    return int(min(max(est, 32 * 1024 * 1024), 64 * 1024 * 1024))


def _resident_spec(shape):
    """BlockSpec for a grid-invariant operand; single-buffered when supported."""
    index_map = lambda i: (0,) * len(shape)
    try:
        return pl.BlockSpec(shape, index_map, pipeline_mode=pl.Buffered(1))
    except TypeError:  # older BlockSpec signature without pipeline_mode
        return pl.BlockSpec(shape, index_map)


def _bert_self_output_kernel(x_ref, res_ref, w_ref, b_ref, g_ref, beta_ref,
                             o_ref, *, eps, matmul_dtype):
    # x: [TM, H], res: [TM, H], w: [H, H], b/g/beta: [1, H], o: [TM, H]
    x = x_ref[...]
    w = w_ref[...]
    if matmul_dtype is not None:
        x = x.astype(matmul_dtype)
        w = w.astype(matmul_dtype)

    # Dense on the MXU: native-dtype operands, f32 accumulation.
    h = jnp.dot(x, w, preferred_element_type=jnp.float32)
    h = h + b_ref[...].astype(jnp.float32) + res_ref[...].astype(jnp.float32)

    # Dropout is identity in eval/inference mode.

    # LayerNorm over the hidden dim (f32).  Single pass mean / mean-of-squares
    # keeps the number of full [TM, H] f32 temporaries down (VALU slot on v7x).
    mean = jnp.mean(h, axis=-1, keepdims=True)
    mean_sq = jnp.mean(h * h, axis=-1, keepdims=True)
    var = jnp.maximum(mean_sq - mean * mean, 0.0)
    inv = lax.rsqrt(var + eps)
    y = (h - mean) * inv
    y = y * g_ref[...].astype(jnp.float32) + beta_ref[...].astype(jnp.float32)

    o_ref[...] = y.astype(o_ref.dtype)


def bert_self_output(hidden_states, input_tensor, w_dense, b_dense,
                     ln_gamma, ln_beta, *, eps=1e-12, matmul_dtype=None):
    """BertSelfOutput forward (eval mode).

    hidden_states, input_tensor: [B, S, H]
    w_dense: [H, H] stored as [in_dim, out_dim] (TRANSPOSED vs torch
             nn.Linear.weight -- pass `torch_weight.T`).
    b_dense, ln_gamma, ln_beta: [H]
    matmul_dtype: optional dtype for the MXU operands (e.g. jnp.bfloat16 on
             v5e for f32 models); None keeps native dtype / exact numerics.
    Returns [B, S, H].
    """
    B, S, H = hidden_states.shape
    M = B * S
    assert input_tensor.shape == (B, S, H)
    assert w_dense.shape == (H, H), "expected weight as [in_dim, out_dim]"

    if matmul_dtype is not None:
        # Cast the weight once at the boundary: halves its resident VMEM and
        # its HBM read; activation tiles are cast in-kernel (no extra pass).
        w_dense = w_dense.astype(matmul_dtype)

    x = hidden_states.reshape(M, H)
    res = input_tensor.reshape(M, H)

    # Keep 1-D params as 2-D [1, H] for clean TPU layout.
    b2 = b_dense.reshape(1, H)
    g2 = ln_gamma.reshape(1, H)
    beta2 = ln_beta.reshape(1, H)

    x_bytes = jnp.dtype(x.dtype).itemsize
    res_bytes = jnp.dtype(res.dtype).itemsize
    out_bytes = x_bytes
    w_bytes = jnp.dtype(w_dense.dtype).itemsize

    TM = _pick_tm(M, H, x_bytes, res_bytes, out_bytes, w_bytes)
    grid = (pl.cdiv(M, TM),)
    vmem_limit = _vmem_limit_bytes(TM, H, x_bytes, res_bytes, out_bytes, w_bytes)

    out = pl.pallas_call(
        functools.partial(_bert_self_output_kernel, eps=float(eps),
                          matmul_dtype=matmul_dtype),
        out_shape=jax.ShapeDtypeStruct((M, H), hidden_states.dtype),
        grid=grid,
        in_specs=[
            pl.BlockSpec((TM, H), lambda i: (i, 0)),   # hidden_states tile
            pl.BlockSpec((TM, H), lambda i: (i, 0)),   # residual tile
            _resident_spec((H, H)),                    # dense weight (resident)
            _resident_spec((1, H)),                    # dense bias
            _resident_spec((1, H)),                    # LN gamma
            _resident_spec((1, H)),                    # LN beta
        ],
        out_specs=pl.BlockSpec((TM, H), lambda i: (i, 0)),
        compiler_params=pltpu.CompilerParams(
            dimension_semantics=("parallel",),
            vmem_limit_bytes=vmem_limit),
    )(x, res, w_dense, b2, g2, beta2)

    return out.reshape(B, S, H)


def _reference(hidden_states, input_tensor, w_dense, b_dense, ln_gamma,
               ln_beta, eps):
    x = hidden_states.astype(jnp.float32)
    h = x @ w_dense.astype(jnp.float32) + b_dense.astype(jnp.float32)
    h = h + input_tensor.astype(jnp.float32)
    mean = jnp.mean(h, axis=-1, keepdims=True)
    var = jnp.mean(jnp.square(h - mean), axis=-1, keepdims=True)
    y = (h - mean) * jax.lax.rsqrt(var + eps)
    return y * ln_gamma.astype(jnp.float32) + ln_beta.astype(jnp.float32)


if __name__ == "__main__":
    # Small shapes consistent with the module: batch=2, seq=8, hidden=32.
    B, S, H = 2, 8, 32
    eps = 1e-12

    key = jax.random.PRNGKey(0)
    k_h, k_r, k_w, k_b, k_g, k_beta = jax.random.split(key, 6)

    hidden_states = jax.random.normal(k_h, (B, S, H), dtype=jnp.float32)
    input_tensor = jax.random.normal(k_r, (B, S, H), dtype=jnp.float32)

    # nn.Linear-style deterministic init (weight stored as [in, out]).
    bound = 1.0 / math.sqrt(H)
    w_dense = jax.random.uniform(k_w, (H, H), jnp.float32, -bound, bound)
    b_dense = jax.random.uniform(k_b, (H,), jnp.float32, -bound, bound)
    # LayerNorm params (perturbed from gamma=1, beta=0 to make the check real).
    ln_gamma = 1.0 + 0.1 * jax.random.normal(k_g, (H,), dtype=jnp.float32)
    ln_beta = 0.1 * jax.random.normal(k_beta, (H,), dtype=jnp.float32)

    out = bert_self_output(hidden_states, input_tensor, w_dense, b_dense,
                           ln_gamma, ln_beta, eps=eps)
    out = jax.block_until_ready(out)

    ref = _reference(hidden_states, input_tensor, w_dense, b_dense, ln_gamma,
                     ln_beta, eps)
    assert out.shape == (B, S, H), out.shape
    assert jnp.allclose(out, ref, atol=1e-5, rtol=1e-5), "mismatch vs reference"

    # TODO(synk): dropout is omitted -- this kernel implements eval/inference
    # mode only (training-mode dropout would need pltpu.prng_* masking).

    print("KERNEL_OK")
</pallas_src>

<mosaic_0001>
module attributes {stable_mosaic.version = 11 : i64} {
  func.func @_bert_self_output_kernel(%arg0: i32, %arg1: memref<16x32xf32, #tpu.memory_space<vmem>>, %arg2: memref<16x32xf32, #tpu.memory_space<vmem>>, %arg3: memref<32x32xf32, #tpu.memory_space<vmem>>, %arg4: memref<1x32xf32, #tpu.memory_space<vmem>>, %arg5: memref<1x32xf32, #tpu.memory_space<vmem>>, %arg6: memref<1x32xf32, #tpu.memory_space<vmem>>, %arg7: memref<16x32xf32, #tpu.memory_space<vmem>>) attributes {dimension_semantics = [#tpu.dimension_semantics<parallel>], iteration_bounds = array<i64: 1>, scalar_prefetch = 0 : i64, scratch_operands = 0 : i64, tpu.core_type = #tpu.core_type<tc>, window_params = [{transform_indices = @transform_0, window_bounds = array<i64: 16, 32>}, {transform_indices = @transform_1, window_bounds = array<i64: 16, 32>}, {pipeline_mode = #tpu.pipeline_mode<synchronous>, transform_indices = @transform_2, window_bounds = array<i64: 32, 32>}, {pipeline_mode = #tpu.pipeline_mode<synchronous>, transform_indices = @transform_3, window_bounds = array<i64: 1, 32>}, {pipeline_mode = #tpu.pipeline_mode<synchronous>, transform_indices = @transform_4, window_bounds = array<i64: 1, 32>}, {pipeline_mode = #tpu.pipeline_mode<synchronous>, transform_indices = @transform_5, window_bounds = array<i64: 1, 32>}, {transform_indices = @transform_6, window_bounds = array<i64: 16, 32>}]} {
    %c0 = arith.constant 0 : index
    %c0_0 = arith.constant 0 : index
    %0 = vector.load %arg1[%c0, %c0_0] : memref<16x32xf32, #tpu.memory_space<vmem>>, vector<16x32xf32>
    %c0_1 = arith.constant 0 : index
    %c0_2 = arith.constant 0 : index
    %1 = vector.load %arg3[%c0_1, %c0_2] : memref<32x32xf32, #tpu.memory_space<vmem>>, vector<32x32xf32>
    %cst = arith.constant dense<0.000000e+00> : vector<16x32xf32>
    %2 = tpu.matmul %0, %1, %cst {dimension_numbers = #tpu.dot_dimension_numbers<[1], [0], [0], [1], [0, 0, 1, 1], [], []>} : vector<16x32xf32>, vector<32x32xf32>, vector<16x32xf32> -> vector<16x32xf32>
    %c0_3 = arith.constant 0 : index
    %c0_4 = arith.constant 0 : index
    %3 = vector.load %arg4[%c0_3, %c0_4] : memref<1x32xf32, #tpu.memory_space<vmem>>, vector<1x32xf32>
    %4 = vector.broadcast %3 : vector<1x32xf32> to vector<16x32xf32>
    %5 = arith.addf %2, %4 : vector<16x32xf32>
    %c0_5 = arith.constant 0 : index
    %c0_6 = arith.constant 0 : index
    %6 = vector.load %arg2[%c0_5, %c0_6] : memref<16x32xf32, #tpu.memory_space<vmem>>, vector<16x32xf32>
    %7 = arith.addf %5, %6 : vector<16x32xf32>
    %cst_7 = arith.constant dense<0.000000e+00> : vector<16xf32>
    %8 = vector.multi_reduction <add>, %7, %cst_7 [1] : vector<16x32xf32> to vector<16xf32>
    %9 = vector.shape_cast %8 : vector<16xf32> to vector<16x1xf32>
    %cst_8 = arith.constant 3.200000e+01 : f32
    %10 = vector.broadcast %cst_8 : f32 to vector<16x1xf32>
    %11 = arith.divf %9, %10 : vector<16x1xf32>
    %12 = arith.mulf %7, %7 : vector<16x32xf32>
    %cst_9 = arith.constant dense<0.000000e+00> : vector<16xf32>
    %13 = vector.multi_reduction <add>, %12, %cst_9 [1] : vector<16x32xf32> to vector<16xf32>
    %14 = vector.shape_cast %13 : vector<16xf32> to vector<16x1xf32>
    %cst_10 = arith.constant 3.200000e+01 : f32
    %15 = vector.broadcast %cst_10 : f32 to vector<16x1xf32>
    %16 = arith.divf %14, %15 : vector<16x1xf32>
    %17 = arith.mulf %11, %11 : vector<16x1xf32>
    %18 = arith.subf %16, %17 : vector<16x1xf32>
    %cst_11 = arith.constant 0.000000e+00 : f32
    %19 = vector.broadcast %cst_11 : f32 to vector<16x1xf32>
    %20 = arith.maximumf %18, %19 : vector<16x1xf32>
    %cst_12 = arith.constant 9.99999996E-13 : f32
    %21 = vector.broadcast %cst_12 : f32 to vector<16x1xf32>
    %22 = arith.addf %20, %21 : vector<16x1xf32>
    %23 = math.rsqrt %22 : vector<16x1xf32>
    %24 = vector.broadcast %11 : vector<16x1xf32> to vector<16x32xf32>
    %25 = arith.subf %7, %24 : vector<16x32xf32>
    %26 = vector.broadcast %23 : vector<16x1xf32> to vector<16x32xf32>
    %27 = arith.mulf %25, %26 : vector<16x32xf32>
    %c0_13 = arith.constant 0 : index
    %c0_14 = arith.constant 0 : index
    %28 = vector.load %arg5[%c0_13, %c0_14] : memref<1x32xf32, #tpu.memory_space<vmem>>, vector<1x32xf32>
    %29 = vector.broadcast %28 : vector<1x32xf32> to vector<16x32xf32>
    %30 = arith.mulf %27, %29 : vector<16x32xf32>
    %c0_15 = arith.constant 0 : index
    %c0_16 = arith.constant 0 : index
    %31 = vector.load %arg6[%c0_15, %c0_16] : memref<1x32xf32, #tpu.memory_space<vmem>>, vector<1x32xf32>
    %32 = vector.broadcast %31 : vector<1x32xf32> to vector<16x32xf32>
    %33 = arith.addf %30, %32 : vector<16x32xf32>
    %c0_17 = arith.constant 0 : index
    %c0_18 = arith.constant 0 : index
    %34 = vector.load %arg7[%c0_17, %c0_18] : memref<16x32xf32, #tpu.memory_space<vmem>>, vector<16x32xf32>
    tpu.vector_store %arg7[%c0_17, %c0_18], %33 {strides = array<i32>} : memref<16x32xf32, #tpu.memory_space<vmem>>, vector<16x32xf32>,
    return
  }
  func.func @transform_0(%arg0: i32) -> (i32, i32) {
    %c0_i32 = arith.constant 0 : i32
    %c0_i32_0 = arith.constant 0 : i32
    return %arg0, %c0_i32 : i32, i32
  }
  func.func @transform_1(%arg0: i32) -> (i32, i32) {
    %c0_i32 = arith.constant 0 : i32
    %c0_i32_0 = arith.constant 0 : i32
    return %arg0, %c0_i32 : i32, i32
  }
  func.func @transform_2(%arg0: i32) -> (i32, i32) {
    %c0_i32 = arith.constant 0 : i32
    %c0_i32_0 = arith.constant 0 : i32
    %c0_i32_1 = arith.constant 0 : i32
    return %c0_i32, %c0_i32_0 : i32, i32
  }
  func.func @transform_3(%arg0: i32) -> (i32, i32) {
    %c0_i32 = arith.constant 0 : i32
    %c0_i32_0 = arith.constant 0 : i32
    %c0_i32_1 = arith.constant 0 : i32
    return %c0_i32, %c0_i32_0 : i32, i32
  }
  func.func @transform_4(%arg0: i32) -> (i32, i32) {
    %c0_i32 = arith.constant 0 : i32
    %c0_i32_0 = arith.constant 0 : i32
    %c0_i32_1 = arith.constant 0 : i32
    return %c0_i32, %c0_i32_0 : i32, i32
  }
  func.func @transform_5(%arg0: i32) -> (i32, i32) {
    %c0_i32 = arith.constant 0 : i32
    %c0_i32_0 = arith.constant 0 : i32
    %c0_i32_1 = arith.constant 0 : i32
    return %c0_i32, %c0_i32_0 : i32, i32
  }
  func.func @transform_6(%arg0: i32) -> (i32, i32) {
    %c0_i32 = arith.constant 0 : i32
    %c0_i32_0 = arith.constant 0 : i32
    return %arg0, %c0_i32 : i32, i32
  }
}

</mosaic_0001>

<bundles_post_ra>
// kernel: tpu_custom_call.1
= control target key start
LH: loop header
LB: loop body
LE: loop exit
PB: predicated region body
PF: predicated region fallthrough
CT: control target
= control target key end

     0   :  { %11 = vsyncpa [#allocation3], 0  ;;  %s435_s0 = inlined_call_operand.hbm [shape: f32[16,32], index: 0, kind: input, shape index: {}]   ;;  %s436_s1 = inlined_call_operand.hbm [shape: f32[16,32], index: 1, kind: input, shape index: {}]   ;;  %s437_s2 = inlined_call_operand.hbm [shape: f32[32,32], index: 2, kind: input, shape index: {}]   ;;  %s438_s3 = inlined_call_operand.vmem [shape: f32[1,32], index: 3, kind: input, shape index: {}]   ;;  %s439_s4 = inlined_call_operand.vmem [shape: f32[1,32], index: 4, kind: input, shape index: {}]   ;;  %s440_s5 = inlined_call_operand.vmem [shape: f32[1,32], index: 5, kind: input, shape index: {}]   ;;  %s441_s6 = inlined_call_operand.hbm [shape: f32[16,32], index: 6, kind: output, shape index: {}]  }
   0x1   :  { %12 = vsyncpa [#allocation6], 0 }
   0x2   :  { %13 = vsyncpa [#allocation4], 0  ;;  %s353_s21 = smov [#allocation5]   ;;  %s354_s23 = smov [#allocation2]  }
   0x3   :  { %s31_s22 = sshll.u32 %s353_s21, 4  ;;  %s19_s24 = sshll.u32 %s354_s23, 4  ;;  %s32_s22 = int_to_ptr.vmem [resolvable:$true] %s31_s22  ;;  %s20_s24 = int_to_ptr.vmem [resolvable:$true] %s19_s24 }
   0x4   :  { %s275_s25 = scalar_lea.vmem %s32_s22, 256  ;;  %p280_p1 = scmp.lt.s32.totalorder %s32_s22, %s32_s22 }
   0x5   :  { %p276_p0 = scmp.ne.s32.totalorder %s32_s22, %s275_s25  ;;  %p281_p2 = scmp.lt.s32.totalorder %s275_s25, %s275_s25 }
   0x7   :  { %p282_p3 = por %p281_p2, %p280_p1 }
   0x9   :  { %p283_p4 = pnand %p282_p3, %p276_p0 }
   0xb   :  { %286 = shalt.err (!%p283_p4)
}
   0xc   :  { %s355_s26 = smov 128   ;;  %s356_s27 = smov 8  }
   0xd   :  { %37 = dma.hbm_to_vmem [thread:$0]  %s436_s1, 256, %s32_s22, [#allocation6], %s355_s26, %s355_s26, %s356_s27  }
   0xe   :  { %s295_s30 = scalar_lea.vmem %s20_s24, 256  ;;  %p300_p6 = scmp.lt.s32.totalorder %s20_s24, %s20_s24 }
   0xf   :  { %p296_p5 = scmp.ne.s32.totalorder %s20_s24, %s295_s30  ;;  %p301_p7 = scmp.lt.s32.totalorder %s295_s30, %s295_s30 }
  0x11   :  { %p302_p8 = por %p301_p7, %p300_p6 }
  0x13   :  { %p303_p9 = pnand %p302_p8, %p296_p5 }
  0x15   :  { %306 = shalt.err (!%p303_p9)
}
  0x16   :  { %25 = dma.hbm_to_vmem [thread:$0]  %s435_s0, 256, %s20_s24, [#allocation3], %s355_s26, %s355_s26, %s356_s27  }
  0x17   :  { %s357_s9 = smov [#allocation7]  }
  0x18   :  { %s43_s10 = sshll.u32 %s357_s9, 4  ;;  %s44_s10 = int_to_ptr.vmem [resolvable:$true] %s43_s10 }
  0x19   :  { %s315_s11 = scalar_lea.vmem %s44_s10, 512  ;;  %p320_p11 = scmp.lt.s32.totalorder %s44_s10, %s44_s10 }
  0x1a   :  { %p316_p10 = scmp.ne.s32.totalorder %s44_s10, %s315_s11  ;;  %p321_p12 = scmp.lt.s32.totalorder %s315_s11, %s315_s11 }
  0x1c   :  { %p322_p13 = por %p321_p12, %p320_p11 }
  0x1e   :  { %p323_p0 = pnand %p322_p13, %p316_p10 }
  0x20   :  { %326 = shalt.err (!%p323_p0)
}
  0x21   :  { %49 = dma.hbm_to_vmem [thread:$0]  %s437_s2, 512, %s44_s10, [#allocation6], %s355_s26, %s355_s26, %s356_s27  }
  0x22   :  { %347 = dma.done.wait [#allocation3], 256  }
  0x23   :  { %348 = vsyncadd [#allocation3], 4294967040 }
  0x24   :  { %349 = dma.done.wait [#allocation6], 768  }
  0x25   :  { %350 = vsyncadd [#allocation6], 4294966528  ;;  %vm78_vm0 = vcmask 261120   ;;  %v70_v0 = vld [vmem:[#allocation7 + $0x18] sm:$0xff]  ;;  %v69_v1 = vld [vmem:[#allocation7 + $0x10] sm:$0xff]  ;;  %s358_s16 = smov [#allocation8]  }
  0x26   :  { %246 = vmatprep.subr.mxu0 %v70_v0  ;;  %v65_v2 = vld [vmem:[#allocation2] sm:$0xff]  ;;  %v68_v3 = vld [vmem:[#allocation7 + $0x8] sm:$0xff]  ;;  %v161_v9 = vld [vmem:[#allocation5 + $0x8] sm:$0xff]  ;;  %s222_s17 = sshll.u32 %s358_s16, 4  ;;  %s223_s17 = int_to_ptr.vmem [resolvable:$true] %s222_s17 }
  0x27   :  { %247 = vmatpush3.msra.mxu0 %v70_v0  ;;  %254 = vmatprep.mubr.msk.f32.mxu0 %vm78_vm0, %v65_v2  ;;  %v67_v4 = vld [vmem:[#allocation7] sm:$0xff]  ;;  %v66_v5 = vld [vmem:[#allocation2 + $0x8] sm:$0xff]  ;;  %v160_v11 = vld [vmem:[#allocation5] sm:$0xff]  ;;  %p332_p2 = scmp.lt.s32.totalorder %s223_s17, %s223_s17 }
  0x28   :  { %248 = vmatprep.subr.mxu0 %v69_v1  ;;  %v235_v6 = vld [vmem:[%s438_s3] ss:$0 sm:$0xff] }
  0x29   :  { %249 = vmatpush3.msra.mxu0 %v69_v1  ;;  %v238_v39 = vld [vmem:[%s439_s4] ss:$0 sm:$0xff]  ;;  %s327_s4 = scalar_lea.vmem %s223_s17, 256 }
  0x2a   :  { %250 = vmatprep.subr.mxu0 %v68_v3  ;;  %v239_v41 = vld [vmem:[%s440_s5] ss:$0 sm:$0xff]  ;;  %p328_p1 = scmp.ne.s32.totalorder %s223_s17, %s327_s4  ;;  %p333_p3 = scmp.lt.s32.totalorder %s327_s4, %s327_s4 }
  0x2b   :  { %251 = vmatpush3.msra.mxu0 %v68_v3 }
  0x2c   :  { %252 = vmatprep.subr.mxu0 %v67_v4  ;;  %p334_p4 = por %p333_p3, %p332_p2 }
  0x2d   :  { %253 = vmatpush3.msra.mxu0 %v67_v4 }
  0x2e   :  { %255 = vmatmul.mubr.msk.f32.vlgmr.msra.gmra.mxu0 %vm78_vm0, %v66_v5  ;;  %p335_p5 = pnand %p334_p4, %p328_p1 }
  0xee   :  { %v256_v7 = vpop.f32.mrf.mxu0 }
  0xef   :  { %v157_v8 = vadd.f32 %v256_v7, %v235_v6 }
  0xf0   :  { %v151_v10 = vpop.f32.mrf.mxu0 }
  0xf1   :  { %v152_v12 = vadd.f32 %v235_v6, %v151_v10  ;;  %v163_v13 = vadd.f32 %v161_v9, %v157_v8 }
  0xf3   :  { %v162_v14 = vadd.f32 %v160_v11, %v152_v12  ;;  %v174_v18 = vmul.f32 %v163_v13, %v163_v13  ;;  %v167_v19 = vsel %vm78_vm0, %v163_v13, 0.0 }
  0xf5   :  { %v164_v15 = vsel %vm78_vm0, %v162_v14, 0.0  ;;  %v173_v16 = vmul.f32 %v162_v14, %v162_v14  ;;  %v178_v20 = vsel %vm78_vm0, %v174_v18, 0.0 }
  0xf6   :  { %165 = vadd.xlane.f32.xlu0 %v164_v15 }
  0xf7   :  { %v175_v17 = vsel %vm78_vm0, %v173_v16, 0.0 }
  0xf8   :  { %176 = vadd.xlane.f32.xlu1 %v175_v17 }
  0xfa   :  { %168 = vadd.xlane.f32.xlu0 %v167_v19 }
  0xfc   :  { %179 = vadd.xlane.f32.xlu1 %v178_v20 }
 0x17f   :  { %v166_v21 = vpop.xlane.xlu0 %165 }
 0x180   :  { %v171_v22 = vmul.f32 0.03125, %v166_v21 }
 0x181   :  { %v177_v23 = vpop.xlane.xlu1 %176 }
 0x182   :  { %v183_v24 = vmul.f32 %v171_v22, %v171_v22  ;;  %v181_v25 = vmul.f32 0.03125, %v177_v23  ;;  %v193_v37 = vsub.f32 %v162_v14, %v171_v22 }
 0x183   :  { %v169_v26 = vpop.xlane.xlu0 %168 }
 0x184   :  { %v185_v27 = vsub.f32 %v181_v25, %v183_v24  ;;  %v172_v28 = vmul.f32 0.03125, %v169_v26 }
 0x185   :  { %v180_v29 = vpop.xlane.xlu1 %179 }
 0x186   :  { %v187_v30 = vmax.f32 %v185_v27, 0.0  ;;  %v184_v31 = vmul.f32 %v172_v28, %v172_v28  ;;  %v182_v32 = vmul.f32 0.03125, %v180_v29  ;;  %v194_v42 = vsub.f32 %v163_v13, %v172_v28 }
 0x188   :  { %v189_v33 = vadd.f32 1e-12, %v187_v30  ;;  %v186_v34 = vsub.f32 %v182_v32, %v184_v31 }
 0x18a   :  { %263 = vrsqrt.f32 %v189_v33  ;;  %v188_v35 = vmax.f32 %v186_v34, 0.0 }
 0x18c   :  { %v190_v36 = vadd.f32 1e-12, %v188_v35 }
 0x18e   :  { %265 = vrsqrt.f32 %v190_v36 }
 0x197   :  { %v264_v38 = vpop.eup %263 }
 0x198   :  { %v195_v40 = vmul.f32 %v264_v38, %v193_v37 }
 0x19a   :  { %v204_v43 = vmul.f32 %v238_v39, %v195_v40 }
 0x19b   :  { %v266_v44 = vpop.eup %265 }
 0x19c   :  { %v196_v45 = vmul.f32 %v266_v44, %v194_v42  ;;  %v213_v46 = vadd.f32 %v239_v41, %v204_v43 }
 0x19e   :  { %v205_v47 = vmul.f32 %v238_v39, %v196_v45  ;;  %215 = vst.msk [vmem:[#allocation8] sm:$0xff] %vm78_vm0, %v213_v46 }
 0x1a0   :  { %v214_v48 = vadd.f32 %v239_v41, %v205_v47 }
 0x1a2   :  { %216 = vst.msk [vmem:[#allocation8 + $0x8] sm:$0xff] %vm78_vm0, %v214_v48 }
 0x1a3   :  { %338 = shalt.err (!%p335_p5)
}
 0x1a4   :  { %228 = dma.vmem_to_hbm [thread:$0]  %s223_s17, 256, %s441_s6, [#allocation4], %s355_s26, %s355_s26, %s356_s27  }
 0x1a5   :  { %351 = dma.done.wait [#allocation4], 256  }
 0x1a6   :  { %352 = vsyncadd [#allocation4], 4294967040 }
 0x1a7   :  { %232 = vsyncpa [#allocation3], 1 }
 0x1a8   :  { %233 = vsyncpa [#allocation6], 1 }
 0x1a9   :  { %234 = vsyncpa [#allocation4], 1 }

</bundles_post_ra>
